<compile_context>
chip_gen: v7x
topology: tpu7x:2x2x1
jax: 0.10.0
libtpu: 0.0.40
codegen_flags: <defaults>
</compile_context>

<pallas_src>
import functools

import jax
import jax.numpy as jnp
from jax.experimental import pallas as pl
from jax.experimental.pallas import tpu as pltpu


# ----------------------------- Pallas kernels ------------------------------ #

def _fullk_kernel(p_ref, w_ref, b_ref, o_ref, *, relu):
    """out = [relu](patches @ W_scaled + bias), single full-K dot per tile."""
    y = jnp.dot(p_ref[...], w_ref[...], preferred_element_type=jnp.float32)
    y = y + b_ref[...]
    if relu:
        y = jnp.maximum(y, 0.0)
    o_ref[...] = y.astype(o_ref.dtype)


def _fullk_res_kernel(p_ref, w_ref, b_ref, r_ref, o_ref):
    """out = relu(patches @ W_scaled + bias + residual), single full-K dot."""
    y = jnp.dot(p_ref[...], w_ref[...], preferred_element_type=jnp.float32)
    y = y + b_ref[...] + r_ref[...].astype(jnp.float32)
    o_ref[...] = jnp.maximum(y, 0.0).astype(o_ref.dtype)


def _ktiled_kernel(p_ref, w_ref, b_ref, o_ref, acc_ref, *, relu):
    """K-tiled fallback (huge K): accumulator initialized with the bias."""
    @pl.when(pl.program_id(2) == 0)
    def _init():
        acc_ref[...] = jnp.broadcast_to(b_ref[...], acc_ref.shape)

    acc_ref[...] += jnp.dot(p_ref[...], w_ref[...],
                            preferred_element_type=jnp.float32)

    @pl.when(pl.program_id(2) == pl.num_programs(2) - 1)
    def _finalize():
        y = acc_ref[...]
        if relu:
            y = jnp.maximum(y, 0.0)
        o_ref[...] = y.astype(o_ref.dtype)


def _ktiled_res_kernel(p_ref, w_ref, b_ref, r_ref, o_ref, acc_ref):
    @pl.when(pl.program_id(2) == 0)
    def _init():
        acc_ref[...] = jnp.broadcast_to(b_ref[...], acc_ref.shape)

    acc_ref[...] += jnp.dot(p_ref[...], w_ref[...],
                            preferred_element_type=jnp.float32)

    @pl.when(pl.program_id(2) == pl.num_programs(2) - 1)
    def _finalize():
        y = acc_ref[...] + r_ref[...].astype(jnp.float32)
        o_ref[...] = jnp.maximum(y, 0.0).astype(o_ref.dtype)


# --------------------------- tiled pallas wrapper --------------------------- #

_FULL_K_MAX = 4608          # 9 * 512 — largest K of any ResNet basic block


def _round_up(x, m):
    return (x + m - 1) // m * m


def _choose_tm(M):
    """M tile: multiple of 16 (bf16 sublane packing); >= 2 tiles when M > 32
    so both v7x TensorCores receive work; capped at 512."""
    if M <= 32:
        return _round_up(M, 16)
    if M <= 1024:
        return _round_up(pl.cdiv(M, 2), 16)
    return 512


def _vmem_limit_bytes():
    """~75% of physical VMEM, capped: safe on v7x (64 MiB), larger on v5e/v6e."""
    try:
        cap = getattr(pltpu.get_tpu_info(), "vmem_capacity_bytes",
                      64 * 1024 * 1024)
    except Exception:
        cap = 64 * 1024 * 1024
    return int(min(96 * 1024 * 1024, max(32 * 1024 * 1024, 0.75 * cap)))


def _fused_matmul(patches, w_mat, scale, bias, *, residual=None, relu=True,
                  out_dtype=jnp.float32, keep_padded=False):
    """Fused conv-as-matmul + folded BN (+ residual add) (+ ReLU).

    patches : (M, Kp) bf16 with K already zero-padded to a multiple of 128.
    w_mat   : (K, N) f32, K <= Kp.   scale/bias: per-output-channel (1, N).
    residual: optional (M, N) or (M, Npad), any float dtype (upcast in-kernel).
    Returns (M, N) (or (M, Npad) if keep_padded) in out_dtype.
    """
    M, Kp = patches.shape
    K, N = w_mat.shape
    assert patches.dtype == jnp.bfloat16
    assert Kp % 128 == 0 and Kp >= K

    # N tiling: full-N when it fits so each patch tile is read from HBM once.
    if _round_up(N, 128) <= 512:
        Npad = _round_up(N, 128)
        tn = Npad
    else:
        tn = 256
        Npad = _round_up(N, 256)

    # K: collapse the reduction into one full-K dot whenever it fits VMEM.
    full_k = Kp <= _FULL_K_MAX
    if not full_k:
        tk = 512
        kp2 = _round_up(Kp, tk)
        if kp2 != Kp:
            patches = jnp.pad(patches, ((0, 0), (0, kp2 - Kp)))
            Kp = kp2

    tm = _choose_tm(M)
    num_m = pl.cdiv(M, tm)

    # Fold BN scale into weight columns (exact, per-output-channel); zero-pad
    # K rows / N cols so they contribute 0; cast MXU operands to bf16.
    w_scaled = (w_mat.astype(jnp.float32) * scale.reshape(1, N)).astype(jnp.bfloat16)
    w_p = jnp.pad(w_scaled, ((0, Kp - K), (0, Npad - N)))
    b_p = jnp.pad(bias.reshape(1, N).astype(jnp.float32), ((0, 0), (0, Npad - N)))

    operands = [patches, w_p, b_p]
    if residual is not None:
        assert residual.shape[0] == M
        if residual.shape[1] != Npad:
            residual = jnp.pad(residual, ((0, 0), (0, Npad - residual.shape[1])))
        operands.append(residual)

    if full_k:
        grid = (num_m, Npad // tn)
        in_specs = [
            pl.BlockSpec((tm, Kp), lambda i, j: (i, 0)),      # patches (bf16)
            pl.BlockSpec((Kp, tn), lambda i, j: (0, j)),      # resident weights
            pl.BlockSpec((1, tn), lambda i, j: (0, j)),       # folded BN bias
        ]
        out_spec = pl.BlockSpec((tm, tn), lambda i, j: (i, j))
        scratch = []
        if residual is None:
            kernel = functools.partial(_fullk_kernel, relu=relu)
        else:
            in_specs.append(pl.BlockSpec((tm, tn), lambda i, j: (i, j)))
            kernel = _fullk_res_kernel
        dim_sem = ("parallel", "parallel")
    else:
        grid = (num_m, Npad // tn, Kp // tk)
        in_specs = [
            pl.BlockSpec((tm, tk), lambda i, j, k: (i, k)),
            pl.BlockSpec((tk, tn), lambda i, j, k: (k, j)),
            pl.BlockSpec((1, tn), lambda i, j, k: (0, j)),
        ]
        out_spec = pl.BlockSpec((tm, tn), lambda i, j, k: (i, j))
        scratch = [pltpu.VMEM((tm, tn), jnp.float32)]
        if residual is None:
            kernel = functools.partial(_ktiled_kernel, relu=relu)
        else:
            in_specs.append(pl.BlockSpec((tm, tn), lambda i, j, k: (i, j)))
            kernel = _ktiled_res_kernel
        dim_sem = ("parallel", "parallel", "arbitrary")

    out_bytes = M * Npad * jnp.dtype(out_dtype).itemsize
    res_bytes = (residual.size * residual.dtype.itemsize
                 if residual is not None else 0)
    cost = pl.CostEstimate(
        flops=int(2 * M * Npad * Kp),
        transcendentals=0,
        bytes_accessed=int(patches.size * 2 + w_p.size * 2 + b_p.size * 4
                           + out_bytes + res_bytes))

    out = pl.pallas_call(
        kernel,
        out_shape=jax.ShapeDtypeStruct((M, Npad), out_dtype),
        grid=grid,
        in_specs=in_specs,
        out_specs=out_spec,
        scratch_shapes=scratch,
        compiler_params=pltpu.CompilerParams(
            dimension_semantics=dim_sem,
            vmem_limit_bytes=_vmem_limit_bytes()),
        cost_estimate=cost,
    )(*operands)
    return out if keep_padded else out[:, :N]


# ------------------------------ JAX glue ----------------------------------- #

def im2col(x_nhwc, ksize, stride, pad, *, k_pad_to=None, dtype=jnp.bfloat16):
    """x: (B,H,W,C) -> patches (B*Ho*Wo, k*k*C [zero-padded to k_pad_to]),
    tap-major, channel-minor.  The K zero-pad is fused into the concat."""
    B, H, W, C = x_nhwc.shape
    xp = jnp.pad(x_nhwc, ((0, 0), (pad, pad), (pad, pad), (0, 0))).astype(dtype)
    Ho = (H + 2 * pad - ksize) // stride + 1
    Wo = (W + 2 * pad - ksize) // stride + 1
    taps = []
    for dh in range(ksize):
        for dw in range(ksize):
            taps.append(
                xp[:, dh:dh + stride * Ho:stride, dw:dw + stride * Wo:stride, :])
    K = ksize * ksize * C
    if k_pad_to is not None and k_pad_to > K:
        taps.append(jnp.zeros((B, Ho, Wo, k_pad_to - K), dtype))
    patches = jnp.concatenate(taps, axis=-1)              # (B, Ho, Wo, Kp)
    return patches.reshape(B * Ho * Wo, patches.shape[-1]), (B, Ho, Wo)


def fold_bn(gamma, beta, mean, var, eps=1e-5):
    """Fold eval-mode BatchNorm into per-channel scale/bias (shape (1, C))."""
    scale = gamma / jnp.sqrt(var + eps)
    bias = beta - mean * scale
    return scale.reshape(1, -1), bias.reshape(1, -1)


def _w_mat(w):
    """(KH, KW, Cin, Cout) -> (KH*KW*Cin, Cout), matching im2col ordering."""
    kh, kw, cin, cout = w.shape
    return w.reshape(kh * kw * cin, cout)


def residual_block_forward(x_nhwc, params, stride):
    """ResidualBlock forward, x: (B, H, W, Cin) -> (B, H//stride, W//stride, Cout)."""
    B, H, W, Cin = x_nhwc.shape
    Cout = params["w1"].shape[-1]

    # left branch, conv1 (3x3, stride) + BN + ReLU -> bf16 intermediate
    k1_pad = _round_up(9 * Cin, 128)
    p1, (_, Ho, Wo) = im2col(x_nhwc, 3, stride, 1, k_pad_to=k1_pad)
    s1, b1 = fold_bn(*params["bn1"])
    y1 = _fused_matmul(p1, _w_mat(params["w1"]), s1, b1, relu=True,
                       out_dtype=jnp.bfloat16)             # (M, Cout) bf16
    M = B * Ho * Wo

    # right branch: conv1x1(stride) + BN when downsampling, else identity
    if stride > 1:
        kr_pad = _round_up(Cin, 128)
        pr = x_nhwc[:, ::stride, ::stride, :][:, :Ho, :Wo, :].reshape(M, Cin)
        pr = jnp.pad(pr.astype(jnp.bfloat16), ((0, 0), (0, kr_pad - Cin)))
        sr, br = fold_bn(*params["bnr"])
        right = _fused_matmul(pr, _w_mat(params["wr"]), sr, br, relu=False,
                              out_dtype=jnp.bfloat16, keep_padded=True)
    else:
        # Identity shortcut: as in the PyTorch spec, stride==1 implies Cin==Cout.
        right = x_nhwc.reshape(M, Cin)

    # left conv2 (3x3, stride 1) + BN, fused with residual add + ReLU
    k2_pad = _round_up(9 * Cout, 128)
    p2, _ = im2col(y1.reshape(B, Ho, Wo, Cout), 3, 1, 1, k_pad_to=k2_pad)
    s2, b2 = fold_bn(*params["bn2"])
    out = _fused_matmul(p2, _w_mat(params["w2"]), s2, b2, residual=right,
                        out_dtype=jnp.float32)
    return out.reshape(B, Ho, Wo, Cout)


def block_group_forward(x_nchw, block_params, first_stride):
    """BlockGroup forward.  Input/output are NCHW, like the PyTorch module."""
    x = jnp.transpose(x_nchw, (0, 2, 3, 1))  # NCHW -> NHWC
    for i, params in enumerate(block_params):
        stride = first_stride if i == 0 else 1
        x = residual_block_forward(x, params, stride)
    return jnp.transpose(x, (0, 3, 1, 2))  # NHWC -> NCHW


# --------------------------- parameter init -------------------------------- #

def _init_bn(key, c):
    k = jax.random.split(key, 4)
    gamma = 1.0 + 0.1 * jax.random.normal(k[0], (c,), jnp.float32)
    beta = 0.1 * jax.random.normal(k[1], (c,), jnp.float32)
    mean = 0.1 * jax.random.normal(k[2], (c,), jnp.float32)
    var = 0.5 + jax.random.uniform(k[3], (c,), jnp.float32)
    return (gamma, beta, mean, var)


def init_residual_block(key, cin, cout, stride):
    if stride == 1:
        assert cin == cout, "identity shortcut requires cin == cout"
    k = jax.random.split(key, 6)
    p = {
        "w1": 0.1 * jax.random.normal(k[0], (3, 3, cin, cout), jnp.float32),
        "bn1": _init_bn(k[1], cout),
        "w2": 0.1 * jax.random.normal(k[2], (3, 3, cout, cout), jnp.float32),
        "bn2": _init_bn(k[3], cout),
    }
    if stride > 1:
        p["wr"] = 0.1 * jax.random.normal(k[4], (1, 1, cin, cout), jnp.float32)
        p["bnr"] = _init_bn(k[5], cout)
    return p


def init_block_group(key, n_blocks, in_feats, out_feats, first_stride):
    keys = jax.random.split(key, n_blocks)
    params = [init_residual_block(keys[0], in_feats, out_feats, first_stride)]
    for i in range(1, n_blocks):
        params.append(init_residual_block(keys[i], out_feats, out_feats, 1))
    return params


# ------------------------- pure-JAX reference ------------------------------ #

def _ref_conv(x_nhwc, w, stride, pad):
    return jax.lax.conv_general_dilated(
        x_nhwc, w, window_strides=(stride, stride),
        padding=((pad, pad), (pad, pad)),
        dimension_numbers=("NHWC", "HWIO", "NHWC"))


def _ref_bn(x_nhwc, bn, eps=1e-5):
    gamma, beta, mean, var = bn
    return (x_nhwc - mean) / jnp.sqrt(var + eps) * gamma + beta


def _ref_block(x, p, stride):
    left = _ref_conv(x, p["w1"], stride, 1)
    left = jnp.maximum(_ref_bn(left, p["bn1"]), 0.0)
    left = _ref_conv(left, p["w2"], 1, 1)
    left = _ref_bn(left, p["bn2"])
    if stride > 1:
        right = _ref_bn(_ref_conv(x, p["wr"], stride, 0), p["bnr"])
    else:
        right = x
    return jnp.maximum(left + right, 0.0)


def block_group_ref(x_nchw, block_params, first_stride):
    x = jnp.transpose(x_nchw, (0, 2, 3, 1))
    for i, p in enumerate(block_params):
        x = _ref_block(x, p, first_stride if i == 0 else 1)
    return jnp.transpose(x, (0, 3, 1, 2))


# --------------------------------- main ------------------------------------ #

if __name__ == "__main__":
    key = jax.random.PRNGKey(0)
    kx, kp = jax.random.split(key)

    n_blocks, in_feats, out_feats, first_stride = 2, 4, 8, 2
    x = jax.random.normal(kx, (2, in_feats, 16, 16), jnp.float32)  # NCHW

    params = init_block_group(kp, n_blocks, in_feats, out_feats, first_stride)

    fwd = jax.jit(functools.partial(block_group_forward, first_stride=first_stride))
    out = jax.block_until_ready(fwd(x, params))

    ref = block_group_ref(x, params, first_stride)
    assert out.shape == (2, out_feats, 16 // first_stride, 16 // first_stride), out.shape
    # bf16 MXU operands / bf16 intermediates with f32 accumulation & epilogue
    # vs. the pure-f32 reference.
    max_err = float(jnp.max(jnp.abs(out - ref)))
    assert jnp.allclose(out, ref, atol=5e-2, rtol=5e-2), max_err

    print("KERNEL_OK")
</pallas_src>

<mosaic_0001>
module attributes {stable_mosaic.version = 11 : i64} {
  func.func @_fullk_kernel(%arg0: i32, %arg1: i32, %arg2: memref<64x128xbf16, #tpu.memory_space<vmem>>, %arg3: memref<128x128xbf16, #tpu.memory_space<vmem>>, %arg4: memref<1x128xf32, #tpu.memory_space<vmem>>, %arg5: memref<64x128xbf16, #tpu.memory_space<vmem>>) attributes {dimension_semantics = [#tpu.dimension_semantics<parallel>, #tpu.dimension_semantics<parallel>], iteration_bounds = array<i64: 2, 1>, scalar_prefetch = 0 : i64, scratch_operands = 0 : i64, tpu.core_type = #tpu.core_type<tc>, window_params = [{transform_indices = @transform_0, window_bounds = array<i64: 64, 128>}, {transform_indices = @transform_1, window_bounds = array<i64: 128, 128>}, {transform_indices = @transform_2, window_bounds = array<i64: 1, 128>}, {transform_indices = @transform_3, window_bounds = array<i64: 64, 128>}]} {
    %c0 = arith.constant 0 : index
    %c0_0 = arith.constant 0 : index
    %0 = vector.load %arg2[%c0, %c0_0] : memref<64x128xbf16, #tpu.memory_space<vmem>>, vector<64x128xbf16>
    %c0_1 = arith.constant 0 : index
    %c0_2 = arith.constant 0 : index
    %1 = vector.load %arg3[%c0_1, %c0_2] : memref<128x128xbf16, #tpu.memory_space<vmem>>, vector<128x128xbf16>
    %cst = arith.constant dense<0.000000e+00> : vector<64x128xf32>
    %2 = tpu.matmul %0, %1, %cst {dimension_numbers = #tpu.dot_dimension_numbers<[1], [0], [0], [1], [0, 0, 1, 1], [], []>} : vector<64x128xbf16>, vector<128x128xbf16>, vector<64x128xf32> -> vector<64x128xf32>
    %c0_3 = arith.constant 0 : index
    %c0_4 = arith.constant 0 : index
    %3 = vector.load %arg4[%c0_3, %c0_4] : memref<1x128xf32, #tpu.memory_space<vmem>>, vector<1x128xf32>
    %4 = vector.broadcast %3 : vector<1x128xf32> to vector<64x128xf32>
    %5 = arith.addf %2, %4 : vector<64x128xf32>
    %cst_5 = arith.constant 0.000000e+00 : f32
    %6 = vector.broadcast %cst_5 : f32 to vector<64x128xf32>
    %7 = arith.maximumf %5, %6 : vector<64x128xf32>
    %8 = arith.truncf %7 : vector<64x128xf32> to vector<64x128xbf16>
    %c0_6 = arith.constant 0 : index
    %c0_7 = arith.constant 0 : index
    %9 = vector.load %arg5[%c0_6, %c0_7] : memref<64x128xbf16, #tpu.memory_space<vmem>>, vector<64x128xbf16>
    tpu.vector_store %arg5[%c0_6, %c0_7], %8 {strides = array<i32>} : memref<64x128xbf16, #tpu.memory_space<vmem>>, vector<64x128xbf16>,
    return
  }
  func.func @transform_0(%arg0: i32, %arg1: i32) -> (i32, i32) {
    %c0_i32 = arith.constant 0 : i32
    %c0_i32_0 = arith.constant 0 : i32
    return %arg0, %c0_i32 : i32, i32
  }
  func.func @transform_1(%arg0: i32, %arg1: i32) -> (i32, i32) {
    %c0_i32 = arith.constant 0 : i32
    %c0_i32_0 = arith.constant 0 : i32
    return %c0_i32, %arg1 : i32, i32
  }
  func.func @transform_2(%arg0: i32, %arg1: i32) -> (i32, i32) {
    %c0_i32 = arith.constant 0 : i32
    %c0_i32_0 = arith.constant 0 : i32
    return %c0_i32, %arg1 : i32, i32
  }
  func.func @transform_3(%arg0: i32, %arg1: i32) -> (i32, i32) {
    %c0_i32 = arith.constant 0 : i32
    return %arg0, %arg1 : i32, i32
  }
}

module attributes {stable_mosaic.version = 11 : i64} {
  func.func @_fullk_kernel(%arg0: i32, %arg1: i32, %arg2: memref<64x128xbf16, #tpu.memory_space<vmem>>, %arg3: memref<128x128xbf16, #tpu.memory_space<vmem>>, %arg4: memref<1x128xf32, #tpu.memory_space<vmem>>, %arg5: memref<64x128xbf16, #tpu.memory_space<vmem>>) attributes {dimension_semantics = [#tpu.dimension_semantics<parallel>, #tpu.dimension_semantics<parallel>], iteration_bounds = array<i64: 2, 1>, scalar_prefetch = 0 : i64, scratch_operands = 0 : i64, tpu.core_type = #tpu.core_type<tc>, window_params = [{transform_indices = @transform_0, window_bounds = array<i64: 64, 128>}, {transform_indices = @transform_1, window_bounds = array<i64: 128, 128>}, {transform_indices = @transform_2, window_bounds = array<i64: 1, 128>}, {transform_indices = @transform_3, window_bounds = array<i64: 64, 128>}]} {
    %c0 = arith.constant 0 : index
    %c0_0 = arith.constant 0 : index
    %0 = vector.load %arg2[%c0, %c0_0] : memref<64x128xbf16, #tpu.memory_space<vmem>>, vector<64x128xbf16>
    %c0_1 = arith.constant 0 : index
    %c0_2 = arith.constant 0 : index
    %1 = vector.load %arg3[%c0_1, %c0_2] : memref<128x128xbf16, #tpu.memory_space<vmem>>, vector<128x128xbf16>
    %cst = arith.constant dense<0.000000e+00> : vector<64x128xf32>
    %2 = tpu.matmul %0, %1, %cst {dimension_numbers = #tpu.dot_dimension_numbers<[1], [0], [0], [1], [0, 0, 1, 1], [], []>} : vector<64x128xbf16>, vector<128x128xbf16>, vector<64x128xf32> -> vector<64x128xf32>
    %c0_3 = arith.constant 0 : index
    %c0_4 = arith.constant 0 : index
    %3 = vector.load %arg4[%c0_3, %c0_4] : memref<1x128xf32, #tpu.memory_space<vmem>>, vector<1x128xf32>
    %4 = vector.broadcast %3 : vector<1x128xf32> to vector<64x128xf32>
    %5 = arith.addf %2, %4 : vector<64x128xf32>
    %6 = arith.truncf %5 : vector<64x128xf32> to vector<64x128xbf16>
    %c0_5 = arith.constant 0 : index
    %c0_6 = arith.constant 0 : index
    %7 = vector.load %arg5[%c0_5, %c0_6] : memref<64x128xbf16, #tpu.memory_space<vmem>>, vector<64x128xbf16>
    tpu.vector_store %arg5[%c0_5, %c0_6], %6 {strides = array<i32>} : memref<64x128xbf16, #tpu.memory_space<vmem>>, vector<64x128xbf16>,
    return
  }
  func.func @transform_0(%arg0: i32, %arg1: i32) -> (i32, i32) {
    %c0_i32 = arith.constant 0 : i32
    %c0_i32_0 = arith.constant 0 : i32
    return %arg0, %c0_i32 : i32, i32
  }
  func.func @transform_1(%arg0: i32, %arg1: i32) -> (i32, i32) {
    %c0_i32 = arith.constant 0 : i32
    %c0_i32_0 = arith.constant 0 : i32
    return %c0_i32, %arg1 : i32, i32
  }
  func.func @transform_2(%arg0: i32, %arg1: i32) -> (i32, i32) {
    %c0_i32 = arith.constant 0 : i32
    %c0_i32_0 = arith.constant 0 : i32
    return %c0_i32, %arg1 : i32, i32
  }
  func.func @transform_3(%arg0: i32, %arg1: i32) -> (i32, i32) {
    %c0_i32 = arith.constant 0 : i32
    return %arg0, %arg1 : i32, i32
  }
}

module attributes {stable_mosaic.version = 11 : i64} {
  func.func @_fullk_res_kernel(%arg0: i32, %arg1: i32, %arg2: memref<64x128xbf16, #tpu.memory_space<vmem>>, %arg3: memref<128x128xbf16, #tpu.memory_space<vmem>>, %arg4: memref<1x128xf32, #tpu.memory_space<vmem>>, %arg5: memref<64x128xbf16, #tpu.memory_space<vmem>>, %arg6: memref<64x128xf32, #tpu.memory_space<vmem>>) attributes {dimension_semantics = [#tpu.dimension_semantics<parallel>, #tpu.dimension_semantics<parallel>], iteration_bounds = array<i64: 2, 1>, scalar_prefetch = 0 : i64, scratch_operands = 0 : i64, tpu.core_type = #tpu.core_type<tc>, window_params = [{transform_indices = @transform_0, window_bounds = array<i64: 64, 128>}, {transform_indices = @transform_1, window_bounds = array<i64: 128, 128>}, {transform_indices = @transform_2, window_bounds = array<i64: 1, 128>}, {transform_indices = @transform_3, window_bounds = array<i64: 64, 128>}, {transform_indices = @transform_4, window_bounds = array<i64: 64, 128>}]} {
    %c0 = arith.constant 0 : index
    %c0_0 = arith.constant 0 : index
    %0 = vector.load %arg2[%c0, %c0_0] : memref<64x128xbf16, #tpu.memory_space<vmem>>, vector<64x128xbf16>
    %c0_1 = arith.constant 0 : index
    %c0_2 = arith.constant 0 : index
    %1 = vector.load %arg3[%c0_1, %c0_2] : memref<128x128xbf16, #tpu.memory_space<vmem>>, vector<128x128xbf16>
    %cst = arith.constant dense<0.000000e+00> : vector<64x128xf32>
    %2 = tpu.matmul %0, %1, %cst {dimension_numbers = #tpu.dot_dimension_numbers<[1], [0], [0], [1], [0, 0, 1, 1], [], []>} : vector<64x128xbf16>, vector<128x128xbf16>, vector<64x128xf32> -> vector<64x128xf32>
    %c0_3 = arith.constant 0 : index
    %c0_4 = arith.constant 0 : index
    %3 = vector.load %arg4[%c0_3, %c0_4] : memref<1x128xf32, #tpu.memory_space<vmem>>, vector<1x128xf32>
    %4 = vector.broadcast %3 : vector<1x128xf32> to vector<64x128xf32>
    %5 = arith.addf %2, %4 : vector<64x128xf32>
    %c0_5 = arith.constant 0 : index
    %c0_6 = arith.constant 0 : index
    %6 = vector.load %arg5[%c0_5, %c0_6] : memref<64x128xbf16, #tpu.memory_space<vmem>>, vector<64x128xbf16>
    %7 = arith.extf %6 : vector<64x128xbf16> to vector<64x128xf32>
    %8 = arith.addf %5, %7 : vector<64x128xf32>
    %cst_7 = arith.constant 0.000000e+00 : f32
    %9 = vector.broadcast %cst_7 : f32 to vector<64x128xf32>
    %10 = arith.maximumf %8, %9 : vector<64x128xf32>
    %c0_8 = arith.constant 0 : index
    %c0_9 = arith.constant 0 : index
    %11 = vector.load %arg6[%c0_8, %c0_9] : memref<64x128xf32, #tpu.memory_space<vmem>>, vector<64x128xf32>
    tpu.vector_store %arg6[%c0_8, %c0_9], %10 {strides = array<i32>} : memref<64x128xf32, #tpu.memory_space<vmem>>, vector<64x128xf32>,
    return
  }
  func.func @transform_0(%arg0: i32, %arg1: i32) -> (i32, i32) {
    %c0_i32 = arith.constant 0 : i32
    %c0_i32_0 = arith.constant 0 : i32
    return %arg0, %c0_i32 : i32, i32
  }
  func.func @transform_1(%arg0: i32, %arg1: i32) -> (i32, i32) {
    %c0_i32 = arith.constant 0 : i32
    %c0_i32_0 = arith.constant 0 : i32
    return %c0_i32, %arg1 : i32, i32
  }
  func.func @transform_2(%arg0: i32, %arg1: i32) -> (i32, i32) {
    %c0_i32 = arith.constant 0 : i32
    %c0_i32_0 = arith.constant 0 : i32
    return %c0_i32, %arg1 : i32, i32
  }
  func.func @transform_3(%arg0: i32, %arg1: i32) -> (i32, i32) {
    %c0_i32 = arith.constant 0 : i32
    return %arg0, %arg1 : i32, i32
  }
  func.func @transform_4(%arg0: i32, %arg1: i32) -> (i32, i32) {
    %c0_i32 = arith.constant 0 : i32
    return %arg0, %arg1 : i32, i32
  }
}

module attributes {stable_mosaic.version = 11 : i64} {
  func.func @_fullk_res_kernel(%arg0: i32, %arg1: i32, %arg2: memref<64x128xbf16, #tpu.memory_space<vmem>>, %arg3: memref<128x128xbf16, #tpu.memory_space<vmem>>, %arg4: memref<1x128xf32, #tpu.memory_space<vmem>>, %arg5: memref<64x128xf32, #tpu.memory_space<vmem>>, %arg6: memref<64x128xf32, #tpu.memory_space<vmem>>) attributes {dimension_semantics = [#tpu.dimension_semantics<parallel>, #tpu.dimension_semantics<parallel>], iteration_bounds = array<i64: 2, 1>, scalar_prefetch = 0 : i64, scratch_operands = 0 : i64, tpu.core_type = #tpu.core_type<tc>, window_params = [{transform_indices = @transform_0, window_bounds = array<i64: 64, 128>}, {transform_indices = @transform_1, window_bounds = array<i64: 128, 128>}, {transform_indices = @transform_2, window_bounds = array<i64: 1, 128>}, {transform_indices = @transform_3, window_bounds = array<i64: 64, 128>}, {transform_indices = @transform_4, window_bounds = array<i64: 64, 128>}]} {
    %c0 = arith.constant 0 : index
    %c0_0 = arith.constant 0 : index
    %0 = vector.load %arg2[%c0, %c0_0] : memref<64x128xbf16, #tpu.memory_space<vmem>>, vector<64x128xbf16>
    %c0_1 = arith.constant 0 : index
    %c0_2 = arith.constant 0 : index
    %1 = vector.load %arg3[%c0_1, %c0_2] : memref<128x128xbf16, #tpu.memory_space<vmem>>, vector<128x128xbf16>
    %cst = arith.constant dense<0.000000e+00> : vector<64x128xf32>
    %2 = tpu.matmul %0, %1, %cst {dimension_numbers = #tpu.dot_dimension_numbers<[1], [0], [0], [1], [0, 0, 1, 1], [], []>} : vector<64x128xbf16>, vector<128x128xbf16>, vector<64x128xf32> -> vector<64x128xf32>
    %c0_3 = arith.constant 0 : index
    %c0_4 = arith.constant 0 : index
    %3 = vector.load %arg4[%c0_3, %c0_4] : memref<1x128xf32, #tpu.memory_space<vmem>>, vector<1x128xf32>
    %4 = vector.broadcast %3 : vector<1x128xf32> to vector<64x128xf32>
    %5 = arith.addf %2, %4 : vector<64x128xf32>
    %c0_5 = arith.constant 0 : index
    %c0_6 = arith.constant 0 : index
    %6 = vector.load %arg5[%c0_5, %c0_6] : memref<64x128xf32, #tpu.memory_space<vmem>>, vector<64x128xf32>
    %7 = arith.addf %5, %6 : vector<64x128xf32>
    %cst_7 = arith.constant 0.000000e+00 : f32
    %8 = vector.broadcast %cst_7 : f32 to vector<64x128xf32>
    %9 = arith.maximumf %7, %8 : vector<64x128xf32>
    %c0_8 = arith.constant 0 : index
    %c0_9 = arith.constant 0 : index
    %10 = vector.load %arg6[%c0_8, %c0_9] : memref<64x128xf32, #tpu.memory_space<vmem>>, vector<64x128xf32>
    tpu.vector_store %arg6[%c0_8, %c0_9], %9 {strides = array<i32>} : memref<64x128xf32, #tpu.memory_space<vmem>>, vector<64x128xf32>,
    return
  }
  func.func @transform_0(%arg0: i32, %arg1: i32) -> (i32, i32) {
    %c0_i32 = arith.constant 0 : i32
    %c0_i32_0 = arith.constant 0 : i32
    return %arg0, %c0_i32 : i32, i32
  }
  func.func @transform_1(%arg0: i32, %arg1: i32) -> (i32, i32) {
    %c0_i32 = arith.constant 0 : i32
    %c0_i32_0 = arith.constant 0 : i32
    return %c0_i32, %arg1 : i32, i32
  }
  func.func @transform_2(%arg0: i32, %arg1: i32) -> (i32, i32) {
    %c0_i32 = arith.constant 0 : i32
    %c0_i32_0 = arith.constant 0 : i32
    return %c0_i32, %arg1 : i32, i32
  }
  func.func @transform_3(%arg0: i32, %arg1: i32) -> (i32, i32) {
    %c0_i32 = arith.constant 0 : i32
    return %arg0, %arg1 : i32, i32
  }
  func.func @transform_4(%arg0: i32, %arg1: i32) -> (i32, i32) {
    %c0_i32 = arith.constant 0 : i32
    return %arg0, %arg1 : i32, i32
  }
}

</mosaic_0001>

<bundles_post_ra>
// kernel: block_group_forward.5
= control target key start
LH: loop header
LB: loop body
LE: loop exit
PB: predicated region body
PF: predicated region fallthrough
CT: control target
= control target key end

     0   :  { %s741_s12 = smov 0   ;;  %s743_s13 = smov 0   ;;  %s814_s0 = inlined_call_operand.vmem [shape: bf16[128,128], index: 0, kind: input, shape index: {}]   ;;  %s815_s1 = inlined_call_operand.vmem [shape: bf16[128,128], index: 1, kind: input, shape index: {}]   ;;  %s816_s2 = inlined_call_operand.vmem [shape: f32[1,128], index: 2, kind: input, shape index: {}]   ;;  %s817_s3 = inlined_call_operand.vmem [shape: bf16[128,128], index: 3, kind: output, shape index: {}]  }
   0x1   :  { %s745_s14 = smov 0  }
   0x2 LB: > { %s25_s15 = sadd.s32 1, %s715_s13  ;;  %p550_p0 = scmp.ge.s32.totalorder %s719_s14, 1  ;;  %s719_s14 = sphi %s745_s14, %s13_s14   ;;  %s715_s13 = sphi %s743_s13, %s819_s13   ;;  %s711_s12 = sphi %s741_s12, %s818_s12  }
   0x3   : > { %p27_p1 = scmp.ge.s32.totalorder %s25_s15, 2  ;;  %p169_p2 = scmp.lt.s32.totalorder %s719_s14, 3 }
   0x5   : > { %s821_s15 = smov (%p27_p1, %s25_s15), 0  ;;  %p170_p3 = pnand %p550_p0, %p169_p2 }
   0x6   : > { %v685_v0 = vld [vmem:[%s815_s1] sm:$0xff] (!%p170_p3)   ;;  %s551_s18 = sshll.u32 (!%p170_p3), %s711_s12, 3  ;;  %v686_v1 = vld [vmem:[%s815_s1 + $0x8] sm:$0xff] (!%p170_p3)   ;;  %v687_v2 = vld [vmem:[%s815_s1 + $0x10] sm:$0xff] (!%p170_p3)  }
   0x7   : > { %173 = sbr.rel (%p170_p3) target bundleno = 261 (0x105), region = 32  ;;  %p204_p4 = scmp.lt.s32.totalorder (!%p170_p3), %s551_s18, 15  ;;  %621 = vmatprep.subr.bf16.mxu0 (!%p170_p3), %v685_v0  ;;  %645 = vmatprep.subr.bf16.mxu1 (!%p170_p3), %v685_v0  ;;  %v688_v3 = vld [vmem:[%s815_s1 + $0x18] sm:$0xff] (!%p170_p3)   ;;  %v689_v6 = vld [vmem:[%s815_s1 + $0x20] sm:$0xff] (!%p170_p3)   ;;  %v690_v7 = vld [vmem:[%s815_s1 + $0x28] sm:$0xff] (!%p170_p3)  }
   0x8   : > { %622 = vmatpush3.bf16.msra.mxu0 (!%p170_p3), %v685_v0  ;;  %653 = vmatpush3.bf16.msra.mxu1 (!%p170_p3), %v685_v0  ;;  %v691_v8 = vld [vmem:[%s815_s1 + $0x30] sm:$0xff] (!%p170_p3)   ;;  %v692_v9 = vld [vmem:[%s815_s1 + $0x38] sm:$0xff] (!%p170_p3)   ;;  %v555_v12 = vld [vmem:[%s816_s2] ss:$0 sm:$0xff] (!%p170_p3) }
   0x9   : > { %623 = vmatprep.subr.bf16.mxu0 (!%p170_p3), %v686_v1  ;;  %646 = vmatprep.subr.bf16.mxu1 (!%p170_p3), %v686_v1 }
   0xc   : > { %624 = vmatpush3.bf16.msra.mxu0 (!%p170_p3), %v686_v1  ;;  %654 = vmatpush3.bf16.msra.mxu1 (!%p170_p3), %v686_v1 }
   0xd   : > { %625 = vmatprep.subr.bf16.mxu0 (!%p170_p3), %v687_v2  ;;  %647 = vmatprep.subr.bf16.mxu1 (!%p170_p3), %v687_v2 }
   0xe   : > { %s823_s18 = smov (!%p204_p4, %s551_s18), 15 }
   0xf   : > { %s552_s23 = sshll.u32 %s823_s18, 2 }
  0x10   : > { %s776_s26 = scalar_lea.vmem %s814_s0, %s552_s23  ;;  %626 = vmatpush3.bf16.msra.mxu0 %v687_v2  ;;  %655 = vmatpush3.bf16.msra.mxu1 %v687_v2  ;;  %s223_s17 = scalar_lea.vmem %s817_s3, %s552_s23 }
  0x11   : > { %v693_v4 = vld [vmem:[%s776_s26] sm:$0xff]   ;;  %v694_v5 = vld [vmem:[%s776_s26 + $0x10] sm:$0xff]   ;;  %627 = vmatprep.subr.bf16.mxu0 %v688_v3  ;;  %648 = vmatprep.subr.bf16.mxu1 %v688_v3  ;;  %v695_v10 = vld [vmem:[%s776_s26 + $0x8] sm:$0xff]  }
  0x12   : > { %637 = vmatprep.mubr.bf16.mxu0 %v693_v4  ;;  %641 = vmatprep.mubr.bf16.mxu1 %v694_v5  ;;  %v696_v11 = vld [vmem:[%s776_s26 + $0x18] sm:$0xff]  }
  0x14   : > { %628 = vmatpush3.bf16.msra.mxu0 %v688_v3  ;;  %656 = vmatpush3.bf16.msra.mxu1 %v688_v3 }
  0x15   : > { %629 = vmatprep.subr.bf16.mxu0 %v689_v6  ;;  %649 = vmatprep.subr.bf16.mxu1 %v689_v6 }
  0x18   : > { %630 = vmatpush3.bf16.msra.mxu0 %v689_v6  ;;  %657 = vmatpush3.bf16.msra.mxu1 %v689_v6 }
  0x19   : > { %631 = vmatprep.subr.bf16.mxu0 %v690_v7  ;;  %650 = vmatprep.subr.bf16.mxu1 %v690_v7 }
  0x1c   : > { %632 = vmatpush3.bf16.msra.mxu0 %v690_v7  ;;  %658 = vmatpush3.bf16.msra.mxu1 %v690_v7 }
  0x1d   : > { %633 = vmatprep.subr.bf16.mxu0 %v691_v8  ;;  %651 = vmatprep.subr.bf16.mxu1 %v691_v8 }
  0x20   : > { %634 = vmatpush3.bf16.msra.mxu0 %v691_v8  ;;  %659 = vmatpush3.bf16.msra.mxu1 %v691_v8 }
  0x21   : > { %635 = vmatprep.subr.bf16.mxu0 %v692_v9  ;;  %652 = vmatprep.subr.bf16.mxu1 %v692_v9 }
  0x24   : > { %636 = vmatpush3.bf16.msra.mxu0 %v692_v9  ;;  %660 = vmatpush3.bf16.msra.mxu1 %v692_v9 }
  0x27   : > { %638 = vmatmul.mubr.bf16.vlgmr.msra.gmra.mrb[0].mxu0 %v695_v10  ;;  %642 = vmatmul.mubr.bf16.vlgmr.msra.gmra.mrb[0].mxu1 %v696_v11 }
  0xfa   : > { %v639_v13 = vpop.f32.mrb[0].mxu0  ;;  %v643_v14 = vpop.f32.mrb[0].mxu1 }
  0xfb   : > { %v372_v15 = vadd.f32 %v639_v13, %v555_v12  ;;  %v388_v16 = vadd.f32 %v643_v14, %v555_v12  ;;  %v363_v17 = vpop.f32.mrb[1].mxu0  ;;  %v379_v18 = vpop.f32.mrb[1].mxu1 }
  0xfc   : > { %v364_v19 = vadd.f32 %v555_v12, %v363_v17  ;;  %v380_v20 = vadd.f32 %v555_v12, %v379_v18  ;;  %v640_v21 = vpop.f32.mrb[2].mxu0  ;;  %v644_v22 = vpop.f32.mrb[2].mxu1 }
  0xfd   : > { %v375_v23 = vadd.f32 %v640_v21, %v555_v12  ;;  %v391_v24 = vadd.f32 %v644_v22, %v555_v12  ;;  %v366_v25 = vpop.f32.mrb[3].mxu0  ;;  %v382_v26 = vpop.f32.mrb[3].mxu1  ;;  %v396_v29 = vmax.f32 %v372_v15, 0.0  ;;  %v400_v30 = vmax.f32 %v388_v16, 0.0 }
  0xfe   : > { %v367_v27 = vadd.f32 %v555_v12, %v366_v25  ;;  %v383_v28 = vadd.f32 %v555_v12, %v382_v26  ;;  %v394_v33 = vmax.f32 %v364_v19, 0.0  ;;  %v398_v34 = vmax.f32 %v380_v20, 0.0 }
  0xff   : > { %v397_v31 = vmax.f32 %v375_v23, 0.0  ;;  %v401_v32 = vmax.f32 %v391_v24, 0.0 }
 0x100   : > { %v395_v35 = vmax.f32 %v367_v27, 0.0  ;;  %v399_v36 = vmax.f32 %v383_v28, 0.0 }
 0x101   : > { %v594_v37 = vpack.c.bf16 %v397_v31, %v396_v29  ;;  %v604_v38 = vpack.c.bf16 %v401_v32, %v400_v30 }
 0x102   : > { %v589_v39 = vpack.c.bf16 %v395_v35, %v394_v33  ;;  %v599_v40 = vpack.c.bf16 %v399_v36, %v398_v34 }
 0x103   : > { %606 = vst [vmem:[%s223_s17 + $0x8] sm:$0xff] %v594_v37   ;;  %608 = vst [vmem:[%s223_s17 + $0x18] sm:$0xff] %v604_v38  }
 0x104   : > { %590 = vst [vmem:[%s223_s17] sm:$0xff] %v589_v39   ;;  %607 = vst [vmem:[%s223_s17 + $0x10] sm:$0xff] %v599_v40  }
 0x105 PF: > { %s13_s14 = sadd.s32 1, %s719_s14   ;;  %s818_s12 = smov %s715_s13 }
 0x106   : > { %p10_p5 = scmp.ge.s32.totalorder %s13_s14, 4   ;;  %s819_s13 = smov %s821_s15 }
 0x108   :  { %12 = sbr.rel (!%p10_p5) target bundleno = 2 (0x2), region = 68 }

// kernel: block_group_forward.6
= control target key start
LH: loop header
LB: loop body
LE: loop exit
PB: predicated region body
PF: predicated region fallthrough
CT: control target
= control target key end

     0   :  { %s733_s12 = smov 0   ;;  %s735_s13 = smov 0   ;;  %s806_s0 = inlined_call_operand.vmem [shape: bf16[128,128], index: 0, kind: input, shape index: {}]   ;;  %s807_s1 = inlined_call_operand.vmem [shape: bf16[128,128], index: 1, kind: input, shape index: {}]   ;;  %s808_s2 = inlined_call_operand.vmem [shape: f32[1,128], index: 2, kind: input, shape index: {}]   ;;  %s809_s3 = inlined_call_operand.vmem [shape: bf16[128,128], index: 3, kind: output, shape index: {}]  }
   0x1   :  { %s737_s14 = smov 0  }
   0x2 LB: > { %s25_s15 = sadd.s32 1, %s707_s13  ;;  %p542_p0 = scmp.ge.s32.totalorder %s711_s14, 1  ;;  %s711_s14 = sphi %s737_s14, %s13_s14   ;;  %s707_s13 = sphi %s735_s13, %s811_s13   ;;  %s703_s12 = sphi %s733_s12, %s810_s12  }
   0x3   : > { %p27_p1 = scmp.ge.s32.totalorder %s25_s15, 2  ;;  %p169_p2 = scmp.lt.s32.totalorder %s711_s14, 3 }
   0x5   : > { %s813_s15 = smov (%p27_p1, %s25_s15), 0  ;;  %p170_p3 = pnand %p542_p0, %p169_p2 }
   0x6   : > { %v677_v0 = vld [vmem:[%s807_s1] sm:$0xff] (!%p170_p3)   ;;  %s543_s18 = sshll.u32 (!%p170_p3), %s703_s12, 3  ;;  %v678_v1 = vld [vmem:[%s807_s1 + $0x8] sm:$0xff] (!%p170_p3)   ;;  %v679_v2 = vld [vmem:[%s807_s1 + $0x10] sm:$0xff] (!%p170_p3)  }
   0x7   : > { %173 = sbr.rel (%p170_p3) target bundleno = 259 (0x103), region = 32  ;;  %p204_p4 = scmp.lt.s32.totalorder (!%p170_p3), %s543_s18, 15  ;;  %613 = vmatprep.subr.bf16.mxu0 (!%p170_p3), %v677_v0  ;;  %637 = vmatprep.subr.bf16.mxu1 (!%p170_p3), %v677_v0  ;;  %v680_v3 = vld [vmem:[%s807_s1 + $0x18] sm:$0xff] (!%p170_p3)   ;;  %v681_v6 = vld [vmem:[%s807_s1 + $0x20] sm:$0xff] (!%p170_p3)   ;;  %v682_v7 = vld [vmem:[%s807_s1 + $0x28] sm:$0xff] (!%p170_p3)  }
   0x8   : > { %614 = vmatpush3.bf16.msra.mxu0 (!%p170_p3), %v677_v0  ;;  %645 = vmatpush3.bf16.msra.mxu1 (!%p170_p3), %v677_v0  ;;  %v683_v8 = vld [vmem:[%s807_s1 + $0x30] sm:$0xff] (!%p170_p3)   ;;  %v684_v9 = vld [vmem:[%s807_s1 + $0x38] sm:$0xff] (!%p170_p3)   ;;  %v547_v13 = vld [vmem:[%s808_s2] ss:$0 sm:$0xff] (!%p170_p3) }
   0x9   : > { %615 = vmatprep.subr.bf16.mxu0 (!%p170_p3), %v678_v1  ;;  %638 = vmatprep.subr.bf16.mxu1 (!%p170_p3), %v678_v1 }
   0xc   : > { %616 = vmatpush3.bf16.msra.mxu0 (!%p170_p3), %v678_v1  ;;  %646 = vmatpush3.bf16.msra.mxu1 (!%p170_p3), %v678_v1 }
   0xd   : > { %617 = vmatprep.subr.bf16.mxu0 (!%p170_p3), %v679_v2  ;;  %639 = vmatprep.subr.bf16.mxu1 (!%p170_p3), %v679_v2 }
   0xe   : > { %s815_s18 = smov (!%p204_p4, %s543_s18), 15 }
   0xf   : > { %s544_s23 = sshll.u32 %s815_s18, 2 }
  0x10   : > { %s768_s26 = scalar_lea.vmem %s806_s0, %s544_s23  ;;  %618 = vmatpush3.bf16.msra.mxu0 %v679_v2  ;;  %647 = vmatpush3.bf16.msra.mxu1 %v679_v2  ;;  %s223_s17 = scalar_lea.vmem %s809_s3, %s544_s23 }
  0x11   : > { %v685_v4 = vld [vmem:[%s768_s26] sm:$0xff]   ;;  %v686_v5 = vld [vmem:[%s768_s26 + $0x10] sm:$0xff]   ;;  %619 = vmatprep.subr.bf16.mxu0 %v680_v3  ;;  %640 = vmatprep.subr.bf16.mxu1 %v680_v3  ;;  %v687_v10 = vld [vmem:[%s768_s26 + $0x8] sm:$0xff]  }
  0x12   : > { %629 = vmatprep.mubr.bf16.mxu0 %v685_v4  ;;  %633 = vmatprep.mubr.bf16.mxu1 %v686_v5  ;;  %v688_v11 = vld [vmem:[%s768_s26 + $0x18] sm:$0xff]  }
  0x14   : > { %620 = vmatpush3.bf16.msra.mxu0 %v680_v3  ;;  %648 = vmatpush3.bf16.msra.mxu1 %v680_v3 }
  0x15   : > { %621 = vmatprep.subr.bf16.mxu0 %v681_v6  ;;  %641 = vmatprep.subr.bf16.mxu1 %v681_v6 }
  0x18   : > { %622 = vmatpush3.bf16.msra.mxu0 %v681_v6  ;;  %649 = vmatpush3.bf16.msra.mxu1 %v681_v6 }
  0x19   : > { %623 = vmatprep.subr.bf16.mxu0 %v682_v7  ;;  %642 = vmatprep.subr.bf16.mxu1 %v682_v7 }
  0x1c   : > { %624 = vmatpush3.bf16.msra.mxu0 %v682_v7  ;;  %650 = vmatpush3.bf16.msra.mxu1 %v682_v7 }
  0x1d   : > { %625 = vmatprep.subr.bf16.mxu0 %v683_v8  ;;  %643 = vmatprep.subr.bf16.mxu1 %v683_v8 }
  0x20   : > { %626 = vmatpush3.bf16.msra.mxu0 %v683_v8  ;;  %651 = vmatpush3.bf16.msra.mxu1 %v683_v8 }
  0x21   : > { %627 = vmatprep.subr.bf16.mxu0 %v684_v9  ;;  %644 = vmatprep.subr.bf16.mxu1 %v684_v9 }
  0x24   : > { %628 = vmatpush3.bf16.msra.mxu0 %v684_v9  ;;  %652 = vmatpush3.bf16.msra.mxu1 %v684_v9 }
  0x27   : > { %630 = vmatmul.mubr.bf16.vlgmr.msra.gmra.mrb[0].mxu0 %v687_v10  ;;  %634 = vmatmul.mubr.bf16.vlgmr.msra.gmra.mrb[0].mxu1 %v688_v11 }
  0xfa   : > { %v631_v12 = vpop.f32.mrb[0].mxu0  ;;  %v635_v14 = vpop.f32.mrb[0].mxu1 }
  0xfb   : > { %v363_v15 = vpop.f32.mrb[1].mxu0  ;;  %v379_v16 = vpop.f32.mrb[1].mxu1  ;;  %v372_v19 = vadd.f32 %v631_v12, %v547_v13  ;;  %v388_v20 = vadd.f32 %v635_v14, %v547_v13 }
  0xfc   : > { %v632_v17 = vpop.f32.mrb[2].mxu0  ;;  %v636_v18 = vpop.f32.mrb[2].mxu1  ;;  %v364_v25 = vadd.f32 %v547_v13, %v363_v15  ;;  %v380_v26 = vadd.f32 %v547_v13, %v379_v16 }
  0xfd   : > { %v375_v21 = vadd.f32 %v632_v17, %v547_v13  ;;  %v391_v22 = vadd.f32 %v636_v18, %v547_v13  ;;  %v366_v23 = vpop.f32.mrb[3].mxu0  ;;  %v382_v24 = vpop.f32.mrb[3].mxu1 }
  0xfe   : > { %v367_v27 = vadd.f32 %v547_v13, %v366_v23  ;;  %v383_v28 = vadd.f32 %v547_v13, %v382_v24 }
  0xff   : > { %v586_v29 = vpack.c.bf16 %v375_v21, %v372_v19  ;;  %v596_v30 = vpack.c.bf16 %v391_v22, %v388_v20 }
 0x100   : > { %v581_v31 = vpack.c.bf16 %v367_v27, %v364_v25  ;;  %v591_v32 = vpack.c.bf16 %v383_v28, %v380_v26 }
 0x101   : > { %598 = vst [vmem:[%s223_s17 + $0x8] sm:$0xff] %v586_v29   ;;  %600 = vst [vmem:[%s223_s17 + $0x18] sm:$0xff] %v596_v30  }
 0x102   : > { %582 = vst [vmem:[%s223_s17] sm:$0xff] %v581_v31   ;;  %599 = vst [vmem:[%s223_s17 + $0x10] sm:$0xff] %v591_v32  }
 0x103 PF: > { %s13_s14 = sadd.s32 1, %s711_s14   ;;  %s810_s12 = smov %s707_s13 }
 0x104   : > { %p10_p5 = scmp.ge.s32.totalorder %s13_s14, 4   ;;  %s811_s13 = smov %s813_s15 }
 0x106   :  { %12 = sbr.rel (!%p10_p5) target bundleno = 2 (0x2), region = 68 }

// kernel: block_group_forward.7
= control target key start
LH: loop header
LB: loop body
LE: loop exit
PB: predicated region body
PF: predicated region fallthrough
CT: control target
= control target key end

     0   :  { %s795_s15 = smov 0   ;;  %s797_s16 = smov 0   ;;  %s872_s0 = inlined_call_operand.vmem [shape: bf16[128,128], index: 0, kind: input, shape index: {}]   ;;  %s873_s1 = inlined_call_operand.vmem [shape: bf16[128,128], index: 1, kind: input, shape index: {}]   ;;  %s874_s2 = inlined_call_operand.vmem [shape: f32[1,128], index: 2, kind: input, shape index: {}]   ;;  %s875_s3 = inlined_call_operand.vmem [shape: bf16[128,128], index: 3, kind: input, shape index: {}]   ;;  %s876_s4 = inlined_call_operand.vmem [shape: f32[128,128], index: 4, kind: output, shape index: {}]  }
   0x1   :  { %s799_s17 = smov 0  }
   0x2 LB: > { %s26_s18 = sadd.s32 1, %s764_s16  ;;  %p617_p0 = scmp.ge.s32.totalorder %s768_s17, 1  ;;  %s768_s17 = sphi %s799_s17, %s14_s17   ;;  %s764_s16 = sphi %s797_s16, %s878_s16   ;;  %s760_s15 = sphi %s795_s15, %s877_s15  }
   0x3   : > { %p28_p1 = scmp.ge.s32.totalorder %s26_s18, 2  ;;  %p210_p2 = scmp.lt.s32.totalorder %s768_s17, 3 }
   0x5   : > { %s880_s18 = smov (%p28_p1, %s26_s18), 0  ;;  %p211_p3 = pnand %p617_p0, %p210_p2 }
   0x6   : > { %v734_v0 = vld [vmem:[%s873_s1] sm:$0xff] (!%p211_p3)   ;;  %s618_s21 = sshll.u32 (!%p211_p3), %s760_s15, 3  ;;  %v735_v1 = vld [vmem:[%s873_s1 + $0x8] sm:$0xff] (!%p211_p3)   ;;  %v736_v2 = vld [vmem:[%s873_s1 + $0x10] sm:$0xff] (!%p211_p3)  }
   0x7   : > { %214 = sbr.rel (%p211_p3) target bundleno = 261 (0x105), region = 36  ;;  %p255_p4 = scmp.lt.s32.totalorder (!%p211_p3), %s618_s21, 15  ;;  %670 = vmatprep.subr.bf16.mxu0 (!%p211_p3), %v734_v0  ;;  %694 = vmatprep.subr.bf16.mxu1 (!%p211_p3), %v734_v0  ;;  %v737_v3 = vld [vmem:[%s873_s1 + $0x18] sm:$0xff] (!%p211_p3)   ;;  %v738_v6 = vld [vmem:[%s873_s1 + $0x20] sm:$0xff] (!%p211_p3)   ;;  %v739_v7 = vld [vmem:[%s873_s1 + $0x28] sm:$0xff] (!%p211_p3)  }
   0x8   : > { %671 = vmatpush3.bf16.msra.mxu0 (!%p211_p3), %v734_v0  ;;  %702 = vmatpush3.bf16.msra.mxu1 (!%p211_p3), %v734_v0  ;;  %v740_v8 = vld [vmem:[%s873_s1 + $0x30] sm:$0xff] (!%p211_p3)   ;;  %v741_v9 = vld [vmem:[%s873_s1 + $0x38] sm:$0xff] (!%p211_p3)   ;;  %v624_v16 = vld [vmem:[%s874_s2] ss:$0 sm:$0xff] (!%p211_p3) }
   0x9   : > { %672 = vmatprep.subr.bf16.mxu0 (!%p211_p3), %v735_v1  ;;  %695 = vmatprep.subr.bf16.mxu1 (!%p211_p3), %v735_v1 }
   0xc   : > { %673 = vmatpush3.bf16.msra.mxu0 (!%p211_p3), %v735_v1  ;;  %703 = vmatpush3.bf16.msra.mxu1 (!%p211_p3), %v735_v1 }
   0xd   : > { %674 = vmatprep.subr.bf16.mxu0 (!%p211_p3), %v736_v2  ;;  %696 = vmatprep.subr.bf16.mxu1 (!%p211_p3), %v736_v2 }
   0xe   : > { %s882_s21 = smov (!%p255_p4, %s618_s21), 15 }
   0xf   : > { %s619_s26 = sshll.u32 %s882_s21, 2  ;;  %s623_s23 = sshll.u32 %s882_s21, 3 }
  0x10   : > { %s830_s29 = scalar_lea.vmem %s872_s0, %s619_s26  ;;  %675 = vmatpush3.bf16.msra.mxu0 %v736_v2  ;;  %704 = vmatpush3.bf16.msra.mxu1 %v736_v2  ;;  %s274_s19 = scalar_lea.vmem %s875_s3, %s619_s26 }
  0x11   : > { %v742_v4 = vld [vmem:[%s830_s29] sm:$0xff]   ;;  %v743_v5 = vld [vmem:[%s830_s29 + $0x10] sm:$0xff]   ;;  %676 = vmatprep.subr.bf16.mxu0 %v737_v3  ;;  %697 = vmatprep.subr.bf16.mxu1 %v737_v3  ;;  %v744_v10 = vld [vmem:[%s830_s29 + $0x8] sm:$0xff]   ;;  %s283_s25 = scalar_lea.vmem %s876_s4, %s623_s23 }
  0x12   : > { %686 = vmatprep.mubr.bf16.mxu0 %v742_v4  ;;  %690 = vmatprep.mubr.bf16.mxu1 %v743_v5  ;;  %v745_v11 = vld [vmem:[%s830_s29 + $0x18] sm:$0xff]   ;;  %v655_v12 = vld [vmem:[%s274_s19 + $0x8] sm:$0xff]   ;;  %v640_v14 = vld [vmem:[%s274_s19] sm:$0xff]  }
  0x13   : > { %v657_v13 = vld [vmem:[%s274_s19 + $0x18] sm:$0xff]   ;;  %v656_v15 = vld [vmem:[%s274_s19 + $0x10] sm:$0xff]   ;;  %v645_v17 = vunpack.c.l.bf16 %v655_v12  ;;  %v641_v21 = vunpack.c.l.bf16 %v640_v14  ;;  %v646_v27 = vunpack.c.h.bf16 %v655_v12  ;;  %v642_v33 = vunpack.c.h.bf16 %v640_v14 }
  0x14   : > { %677 = vmatpush3.bf16.msra.mxu0 %v737_v3  ;;  %705 = vmatpush3.bf16.msra.mxu1 %v737_v3  ;;  %v653_v18 = vunpack.c.l.bf16 %v657_v13  ;;  %v649_v22 = vunpack.c.l.bf16 %v656_v15  ;;  %v654_v28 = vunpack.c.h.bf16 %v657_v13  ;;  %v650_v34 = vunpack.c.h.bf16 %v656_v15 }
  0x15   : > { %678 = vmatprep.subr.bf16.mxu0 %v738_v6  ;;  %698 = vmatprep.subr.bf16.mxu1 %v738_v6 }
  0x18   : > { %679 = vmatpush3.bf16.msra.mxu0 %v738_v6  ;;  %706 = vmatpush3.bf16.msra.mxu1 %v738_v6 }
  0x19   : > { %680 = vmatprep.subr.bf16.mxu0 %v739_v7  ;;  %699 = vmatprep.subr.bf16.mxu1 %v739_v7 }
  0x1c   : > { %681 = vmatpush3.bf16.msra.mxu0 %v739_v7  ;;  %707 = vmatpush3.bf16.msra.mxu1 %v739_v7 }
  0x1d   : > { %682 = vmatprep.subr.bf16.mxu0 %v740_v8  ;;  %700 = vmatprep.subr.bf16.mxu1 %v740_v8 }
  0x20   : > { %683 = vmatpush3.bf16.msra.mxu0 %v740_v8  ;;  %708 = vmatpush3.bf16.msra.mxu1 %v740_v8 }
  0x21   : > { %684 = vmatprep.subr.bf16.mxu0 %v741_v9  ;;  %701 = vmatprep.subr.bf16.mxu1 %v741_v9 }
  0x24   : > { %685 = vmatpush3.bf16.msra.mxu0 %v741_v9  ;;  %709 = vmatpush3.bf16.msra.mxu1 %v741_v9 }
  0x27   : > { %687 = vmatmul.mubr.bf16.vlgmr.msra.gmra.mrb[0].mxu0 %v744_v10  ;;  %691 = vmatmul.mubr.bf16.vlgmr.msra.gmra.mrb[0].mxu1 %v745_v11 }
  0xfa   : > { %v688_v19 = vpop.f32.mrb[0].mxu0  ;;  %v692_v20 = vpop.f32.mrb[0].mxu1 }
  0xfb   : > { %v432_v23 = vadd.f32 %v688_v19, %v624_v16  ;;  %v448_v24 = vadd.f32 %v692_v20, %v624_v16  ;;  %v423_v25 = vpop.f32.mrb[1].mxu0  ;;  %v439_v26 = vpop.f32.mrb[1].mxu1 }
  0xfc   : > { %v424_v29 = vadd.f32 %v624_v16, %v423_v25  ;;  %v440_v30 = vadd.f32 %v624_v16, %v439_v26  ;;  %v689_v31 = vpop.f32.mrb[2].mxu0  ;;  %v693_v32 = vpop.f32.mrb[2].mxu1 }
  0xfd   : > { %v472_v35 = vadd.f32 %v645_v17, %v432_v23  ;;  %v476_v36 = vadd.f32 %v653_v18, %v448_v24  ;;  %v435_v37 = vadd.f32 %v689_v31, %v624_v16  ;;  %v451_v38 = vadd.f32 %v693_v32, %v624_v16  ;;  %v426_v39 = vpop.f32.mrb[3].mxu0  ;;  %v442_v40 = vpop.f32.mrb[3].mxu1 }
  0xfe   : > { %v470_v41 = vadd.f32 %v641_v21, %v424_v29  ;;  %v474_v42 = vadd.f32 %v649_v22, %v440_v30  ;;  %v427_v43 = vadd.f32 %v624_v16, %v426_v39  ;;  %v443_v44 = vadd.f32 %v624_v16, %v442_v40 }
  0xff   : > { %v480_v45 = vmax.f32 %v472_v35, 0.0  ;;  %v484_v46 = vmax.f32 %v476_v36, 0.0  ;;  %v473_v47 = vadd.f32 %v646_v27, %v435_v37  ;;  %v477_v48 = vadd.f32 %v654_v28, %v451_v38 }
 0x100   : > { %v478_v49 = vmax.f32 %v470_v41, 0.0  ;;  %v482_v50 = vmax.f32 %v474_v42, 0.0  ;;  %v471_v51 = vadd.f32 %v642_v33, %v427_v43  ;;  %v475_v52 = vadd.f32 %v650_v34, %v443_v44 }
 0x101   : > { %488 = vst [vmem:[%s283_s25 + $0x10] sm:$0xff] %v480_v45  ;;  %492 = vst [vmem:[%s283_s25 + $0x30] sm:$0xff] %v484_v46  ;;  %v481_v53 = vmax.f32 %v473_v47, 0.0  ;;  %v485_v54 = vmax.f32 %v477_v48, 0.0 }
 0x102   : > { %486 = vst [vmem:[%s283_s25] sm:$0xff] %v478_v49  ;;  %490 = vst [vmem:[%s283_s25 + $0x20] sm:$0xff] %v482_v50  ;;  %v479_v55 = vmax.f32 %v471_v51, 0.0  ;;  %v483_v56 = vmax.f32 %v475_v52, 0.0 }
 0x103   : > { %489 = vst [vmem:[%s283_s25 + $0x18] sm:$0xff] %v481_v53  ;;  %493 = vst [vmem:[%s283_s25 + $0x38] sm:$0xff] %v485_v54 }
 0x104   : > { %487 = vst [vmem:[%s283_s25 + $0x8] sm:$0xff] %v479_v55  ;;  %491 = vst [vmem:[%s283_s25 + $0x28] sm:$0xff] %v483_v56 }
 0x105 PF: > { %s14_s17 = sadd.s32 1, %s768_s17   ;;  %s877_s15 = smov %s764_s16 }
 0x106   : > { %p11_p5 = scmp.ge.s32.totalorder %s14_s17, 4   ;;  %s878_s16 = smov %s880_s18 }
 0x108   :  { %13 = sbr.rel (!%p11_p5) target bundleno = 2 (0x2), region = 75 }

// kernel: block_group_forward.9
= control target key start
LH: loop header
LB: loop body
LE: loop exit
PB: predicated region body
PF: predicated region fallthrough
CT: control target
= control target key end

     0   :  { %s768_s15 = smov 0   ;;  %s770_s16 = smov 0   ;;  %s841_s0 = inlined_call_operand.vmem [shape: bf16[128,128], index: 0, kind: input, shape index: {}]   ;;  %s842_s1 = inlined_call_operand.vmem [shape: bf16[128,128], index: 1, kind: input, shape index: {}]   ;;  %s843_s2 = inlined_call_operand.vmem [shape: f32[1,128], index: 2, kind: input, shape index: {}]   ;;  %s844_s3 = inlined_call_operand.vmem [shape: f32[128,128], index: 3, kind: input, shape index: {}]   ;;  %s845_s4 = inlined_call_operand.vmem [shape: f32[128,128], index: 4, kind: output, shape index: {}]  }
   0x1   :  { %s772_s17 = smov 0  }
   0x2 LB: > { %s26_s18 = sadd.s32 1, %s737_s16  ;;  %p609_p0 = scmp.ge.s32.totalorder %s741_s17, 1  ;;  %s741_s17 = sphi %s772_s17, %s14_s17   ;;  %s737_s16 = sphi %s770_s16, %s847_s16   ;;  %s733_s15 = sphi %s768_s15, %s846_s15  }
   0x3   : > { %p28_p1 = scmp.ge.s32.totalorder %s26_s18, 2  ;;  %p210_p2 = scmp.lt.s32.totalorder %s741_s17, 3 }
   0x5   : > { %s849_s18 = smov (%p28_p1, %s26_s18), 0  ;;  %p211_p3 = pnand %p609_p0, %p210_p2 }
   0x6   : > { %v707_v0 = vld [vmem:[%s842_s1] sm:$0xff] (!%p211_p3)   ;;  %s610_s21 = sshll.u32 (!%p211_p3), %s733_s15, 3  ;;  %v708_v1 = vld [vmem:[%s842_s1 + $0x8] sm:$0xff] (!%p211_p3)   ;;  %v709_v2 = vld [vmem:[%s842_s1 + $0x10] sm:$0xff] (!%p211_p3)  }
   0x7   : > { %214 = sbr.rel (%p211_p3) target bundleno = 261 (0x105), region = 36  ;;  %p255_p4 = scmp.lt.s32.totalorder (!%p211_p3), %s610_s21, 15  ;;  %643 = vmatprep.subr.bf16.mxu0 (!%p211_p3), %v707_v0  ;;  %667 = vmatprep.subr.bf16.mxu1 (!%p211_p3), %v707_v0  ;;  %v710_v3 = vld [vmem:[%s842_s1 + $0x18] sm:$0xff] (!%p211_p3)   ;;  %v711_v6 = vld [vmem:[%s842_s1 + $0x20] sm:$0xff] (!%p211_p3)   ;;  %v712_v7 = vld [vmem:[%s842_s1 + $0x28] sm:$0xff] (!%p211_p3)  }
   0x8   : > { %644 = vmatpush3.bf16.msra.mxu0 (!%p211_p3), %v707_v0  ;;  %675 = vmatpush3.bf16.msra.mxu1 (!%p211_p3), %v707_v0  ;;  %v713_v8 = vld [vmem:[%s842_s1 + $0x30] sm:$0xff] (!%p211_p3)   ;;  %v714_v9 = vld [vmem:[%s842_s1 + $0x38] sm:$0xff] (!%p211_p3)   ;;  %v616_v12 = vld [vmem:[%s843_s2] ss:$0 sm:$0xff] (!%p211_p3) }
   0x9   : > { %645 = vmatprep.subr.bf16.mxu0 (!%p211_p3), %v708_v1  ;;  %668 = vmatprep.subr.bf16.mxu1 (!%p211_p3), %v708_v1 }
   0xc   : > { %646 = vmatpush3.bf16.msra.mxu0 (!%p211_p3), %v708_v1  ;;  %676 = vmatpush3.bf16.msra.mxu1 (!%p211_p3), %v708_v1 }
   0xd   : > { %647 = vmatprep.subr.bf16.mxu0 (!%p211_p3), %v709_v2  ;;  %669 = vmatprep.subr.bf16.mxu1 (!%p211_p3), %v709_v2 }
   0xe   : > { %s851_s21 = smov (!%p255_p4, %s610_s21), 15 }
   0xf   : > { %s611_s26 = sshll.u32 %s851_s21, 2  ;;  %s613_s14 = sshll.u32 %s851_s21, 3 }
  0x10   : > { %s801_s29 = scalar_lea.vmem %s841_s0, %s611_s26  ;;  %648 = vmatpush3.bf16.msra.mxu0 %v709_v2  ;;  %677 = vmatpush3.bf16.msra.mxu1 %v709_v2  ;;  %s274_s20 = scalar_lea.vmem %s844_s3, %s613_s14 }
  0x11   : > { %v715_v4 = vld [vmem:[%s801_s29] sm:$0xff]   ;;  %v716_v5 = vld [vmem:[%s801_s29 + $0x10] sm:$0xff]   ;;  %649 = vmatprep.subr.bf16.mxu0 %v710_v3  ;;  %670 = vmatprep.subr.bf16.mxu1 %v710_v3  ;;  %v717_v10 = vld [vmem:[%s801_s29 + $0x8] sm:$0xff]   ;;  %s283_s25 = scalar_lea.vmem %s845_s4, %s613_s14 }
  0x12   : > { %659 = vmatprep.mubr.bf16.mxu0 %v715_v4  ;;  %663 = vmatprep.mubr.bf16.mxu1 %v716_v5  ;;  %v718_v11 = vld [vmem:[%s801_s29 + $0x18] sm:$0xff]   ;;  %v456_v14 = vld [vmem:[%s274_s20 + $0x10] sm:$0xff]  ;;  %v454_v20 = vld [vmem:[%s274_s20] sm:$0xff] }
  0x13   : > { %v460_v16 = vld [vmem:[%s274_s20 + $0x30] sm:$0xff]  ;;  %v458_v22 = vld [vmem:[%s274_s20 + $0x20] sm:$0xff]  ;;  %v457_v26 = vld [vmem:[%s274_s20 + $0x18] sm:$0xff] }
  0x14   : > { %650 = vmatpush3.bf16.msra.mxu0 %v710_v3  ;;  %678 = vmatpush3.bf16.msra.mxu1 %v710_v3  ;;  %v461_v28 = vld [vmem:[%s274_s20 + $0x38] sm:$0xff]  ;;  %v455_v34 = vld [vmem:[%s274_s20 + $0x8] sm:$0xff] }
  0x15   : > { %651 = vmatprep.subr.bf16.mxu0 %v711_v6  ;;  %671 = vmatprep.subr.bf16.mxu1 %v711_v6  ;;  %v459_v36 = vld [vmem:[%s274_s20 + $0x28] sm:$0xff] }
  0x18   : > { %652 = vmatpush3.bf16.msra.mxu0 %v711_v6  ;;  %679 = vmatpush3.bf16.msra.mxu1 %v711_v6 }
  0x19   : > { %653 = vmatprep.subr.bf16.mxu0 %v712_v7  ;;  %672 = vmatprep.subr.bf16.mxu1 %v712_v7 }
  0x1c   : > { %654 = vmatpush3.bf16.msra.mxu0 %v712_v7  ;;  %680 = vmatpush3.bf16.msra.mxu1 %v712_v7 }
  0x1d   : > { %655 = vmatprep.subr.bf16.mxu0 %v713_v8  ;;  %673 = vmatprep.subr.bf16.mxu1 %v713_v8 }
  0x20   : > { %656 = vmatpush3.bf16.msra.mxu0 %v713_v8  ;;  %681 = vmatpush3.bf16.msra.mxu1 %v713_v8 }
  0x21   : > { %657 = vmatprep.subr.bf16.mxu0 %v714_v9  ;;  %674 = vmatprep.subr.bf16.mxu1 %v714_v9 }
  0x24   : > { %658 = vmatpush3.bf16.msra.mxu0 %v714_v9  ;;  %682 = vmatpush3.bf16.msra.mxu1 %v714_v9 }
  0x27   : > { %660 = vmatmul.mubr.bf16.vlgmr.msra.gmra.mrb[0].mxu0 %v717_v10  ;;  %664 = vmatmul.mubr.bf16.vlgmr.msra.gmra.mrb[0].mxu1 %v718_v11 }
  0xfa   : > { %v661_v13 = vpop.f32.mrb[0].mxu0  ;;  %v665_v15 = vpop.f32.mrb[0].mxu1 }
  0xfb   : > { %v432_v17 = vadd.f32 %v661_v13, %v616_v12  ;;  %v448_v18 = vadd.f32 %v665_v15, %v616_v12  ;;  %v423_v19 = vpop.f32.mrb[1].mxu0  ;;  %v439_v21 = vpop.f32.mrb[1].mxu1 }
  0xfc   : > { %v424_v23 = vadd.f32 %v616_v12, %v423_v19  ;;  %v440_v24 = vadd.f32 %v616_v12, %v439_v21  ;;  %v662_v25 = vpop.f32.mrb[2].mxu0  ;;  %v666_v27 = vpop.f32.mrb[2].mxu1 }
  0xfd   : > { %v464_v29 = vadd.f32 %v456_v14, %v432_v17  ;;  %v468_v30 = vadd.f32 %v460_v16, %v448_v18  ;;  %v435_v31 = vadd.f32 %v662_v25, %v616_v12  ;;  %v451_v32 = vadd.f32 %v666_v27, %v616_v12  ;;  %v426_v33 = vpop.f32.mrb[3].mxu0  ;;  %v442_v35 = vpop.f32.mrb[3].mxu1 }
  0xfe   : > { %v462_v37 = vadd.f32 %v454_v20, %v424_v23  ;;  %v466_v38 = vadd.f32 %v458_v22, %v440_v24  ;;  %v427_v39 = vadd.f32 %v616_v12, %v426_v33  ;;  %v443_v40 = vadd.f32 %v616_v12, %v442_v35 }
  0xff   : > { %v472_v41 = vmax.f32 %v464_v29, 0.0  ;;  %v476_v42 = vmax.f32 %v468_v30, 0.0  ;;  %v465_v43 = vadd.f32 %v457_v26, %v435_v31  ;;  %v469_v44 = vadd.f32 %v461_v28, %v451_v32 }
 0x100   : > { %v470_v45 = vmax.f32 %v462_v37, 0.0  ;;  %v474_v46 = vmax.f32 %v466_v38, 0.0  ;;  %v463_v47 = vadd.f32 %v455_v34, %v427_v39  ;;  %v467_v48 = vadd.f32 %v459_v36, %v443_v40 }
 0x101   : > { %480 = vst [vmem:[%s283_s25 + $0x10] sm:$0xff] %v472_v41  ;;  %484 = vst [vmem:[%s283_s25 + $0x30] sm:$0xff] %v476_v42  ;;  %v473_v49 = vmax.f32 %v465_v43, 0.0  ;;  %v477_v50 = vmax.f32 %v469_v44, 0.0 }
 0x102   : > { %478 = vst [vmem:[%s283_s25] sm:$0xff] %v470_v45  ;;  %482 = vst [vmem:[%s283_s25 + $0x20] sm:$0xff] %v474_v46  ;;  %v471_v51 = vmax.f32 %v463_v47, 0.0  ;;  %v475_v52 = vmax.f32 %v467_v48, 0.0 }
 0x103   : > { %481 = vst [vmem:[%s283_s25 + $0x18] sm:$0xff] %v473_v49  ;;  %485 = vst [vmem:[%s283_s25 + $0x38] sm:$0xff] %v477_v50 }
 0x104   : > { %479 = vst [vmem:[%s283_s25 + $0x8] sm:$0xff] %v471_v51  ;;  %483 = vst [vmem:[%s283_s25 + $0x28] sm:$0xff] %v475_v52 }
 0x105 PF: > { %s14_s17 = sadd.s32 1, %s741_s17   ;;  %s846_s15 = smov %s737_s16 }
 0x106   : > { %p11_p5 = scmp.ge.s32.totalorder %s14_s17, 4   ;;  %s847_s16 = smov %s849_s18 }
 0x108   :  { %13 = sbr.rel (!%p11_p5) target bundleno = 2 (0x2), region = 75 }

</bundles_post_ra>
